<compile_context>
chip_gen: v7x
topology: tpu7x:2x2x1
jax: 0.10.0
libtpu: 0.0.40
codegen_flags: <defaults>
</compile_context>

<pallas_src>
import math

import jax
import jax.numpy as jnp
from jax.experimental import pallas as pl
from jax.experimental.pallas import tpu as pltpu


def _discriminator_kernel(x_ref, w1_ref, w2_ref, w3_ref, b_ref, o_ref):
    # Feature-major tile: x_ref (16, TM) bf16; weights in PyTorch (out, in)
    # layout, bf16; b_ref packed f32 biases (24 + 32 + odim, 1).
    odim = o_ref.shape[0]
    x = x_ref[...]

    b1 = b_ref[0:24, :]              # (24, 1)  f32
    b2 = b_ref[24:56, :]             # (32, 1)  f32
    b3 = b_ref[56:56 + odim, :]      # (odim,1) f32

    # fc1 + ReLU : (24,16) @ (16,TM) -> (24,TM), f32 accumulate.
    h1 = jnp.dot(w1_ref[...], x, preferred_element_type=jnp.float32) + b1
    h1 = jnp.maximum(h1, 0.0)

    # fc2 + ReLU : (32,24) @ (24,TM) -> (32,TM)
    h2 = jnp.dot(w2_ref[...], h1.astype(jnp.bfloat16),
                 preferred_element_type=jnp.float32) + b2
    h2 = jnp.maximum(h2, 0.0)

    # fc3 : (odim,32) @ (32,TM) -> (odim,TM)
    logits = jnp.dot(w3_ref[...], h2.astype(jnp.bfloat16),
                     preferred_element_type=jnp.float32) + b3

    # Softmax over the feature (sublane) axis, numerically stabilized, f32.
    # Exact divide (review): removes the approx-reciprocal error at no cost.
    m = jnp.max(logits, axis=0, keepdims=True)       # (1, TM)
    e = jnp.exp(logits - m)                           # (odim, TM)
    denom = jnp.sum(e, axis=0, keepdims=True)         # (1, TM)
    o_ref[...] = (e / denom).astype(o_ref.dtype)


def _round_up(n, m):
    return ((n + m - 1) // m) * m


def _choose_tile(batch, block_rows, target_steps):
    """Batch tile along the lane axis: a multiple of 128, or the full batch.

    For batches bigger than one tile we guarantee >= target_steps grid steps
    (pipelining + dual-TC on v7x); block_rows caps per-step VMEM.
    """
    if batch <= 128:
        return batch                      # full-dim block is always legal
    tm = min(block_rows, pl.cdiv(batch, target_steps))
    tm = _round_up(max(tm, 1), 128)       # lane-dense tiles
    if tm >= batch:
        return batch
    return tm


def discriminator_forward(x, params, *, block_rows=16384, target_steps=4):
    """x: [B, 16] float array.  params: PyTorch-layout weights/biases.

    Returns softmax probabilities of shape [B, odim] in float32.
    """
    B = x.shape[0]
    w1 = params["w1"].astype(jnp.bfloat16)            # (24, 16)
    w2 = params["w2"].astype(jnp.bfloat16)            # (32, 24)
    w3 = params["w3"].astype(jnp.bfloat16)            # (odim, 32)
    odim = w3.shape[0]
    b_packed = jnp.concatenate(
        [params["b1"], params["b2"], params["b3"]]
    ).astype(jnp.float32)[:, None]                    # (24+32+odim, 1)

    # Feature-major activations inside the kernel: [features, batch].
    x_t = x.astype(jnp.bfloat16).T                    # (16, B)

    tm = _choose_tile(B, block_rows, target_steps)
    grid = (pl.cdiv(B, tm),)

    def resident(a):
        # Weights / packed bias: same block every step -> stays VMEM-resident.
        return pl.BlockSpec(a.shape, lambda i: (0, 0))

    out_t = pl.pallas_call(
        _discriminator_kernel,
        out_shape=jax.ShapeDtypeStruct((odim, B), jnp.float32),
        grid=grid,
        in_specs=[
            pl.BlockSpec((16, tm), lambda i: (0, i)),   # x: streamed per tile
            resident(w1), resident(w2), resident(w3), resident(b_packed),
        ],
        out_specs=pl.BlockSpec((odim, tm), lambda i: (0, i)),
        compiler_params=pltpu.CompilerParams(
            dimension_semantics=("parallel",)),
    )(x_t, w1, w2, w3, b_packed)

    return out_t.T                                     # (B, odim)


def init_params(key, odim):
    """PyTorch nn.Linear default init: U(-1/sqrt(fan_in), 1/sqrt(fan_in)),
    weights stored in PyTorch (out_features, in_features) layout."""
    dims = [(24, 16), (32, 24), (odim, 32)]
    params = {}
    for i, (fan_out, fan_in) in enumerate(dims, start=1):
        key, kw, kb = jax.random.split(key, 3)
        bound = 1.0 / math.sqrt(fan_in)
        params[f"w{i}"] = jax.random.uniform(
            kw, (fan_out, fan_in), jnp.float32, -bound, bound)
        params[f"b{i}"] = jax.random.uniform(
            kb, (fan_out,), jnp.float32, -bound, bound)
    return params


def reference_forward_f32(x, params):
    """Pure-f32 reference matching the PyTorch module semantics."""
    h1 = jnp.maximum(x @ params["w1"].T + params["b1"], 0.0)
    h2 = jnp.maximum(h1 @ params["w2"].T + params["b2"], 0.0)
    logits = h2 @ params["w3"].T + params["b3"]
    return jax.nn.softmax(logits, axis=1)


def reference_forward_bf16(x, params):
    """Reference mirroring the kernel numerics (bf16 MXU inputs, f32 accum)."""
    def dot(a, w):
        return jnp.dot(a.astype(jnp.bfloat16), w.T.astype(jnp.bfloat16),
                       preferred_element_type=jnp.float32)
    h1 = jnp.maximum(dot(x, params["w1"]) + params["b1"], 0.0)
    h2 = jnp.maximum(dot(h1, params["w2"]) + params["b2"], 0.0)
    logits = dot(h2, params["w3"]) + params["b3"]
    return jax.nn.softmax(logits, axis=1)


if __name__ == "__main__":
    key = jax.random.PRNGKey(0)
    k_param, k_x = jax.random.split(key)

    odim = 8
    batch = 256
    params = init_params(k_param, odim)
    x = jax.random.normal(k_x, (batch, 16), jnp.float32)

    # Default tiling already yields a multi-step (pipelined) grid here:
    # batch=256 -> tm=128 -> grid=(2,).
    out = discriminator_forward(x, params)
    out = jax.block_until_ready(out)
    assert out.shape == (batch, odim)

    # Matches a reference using the same bf16-matmul / f32-accumulate numerics.
    ref_bf16 = reference_forward_bf16(x, params)
    assert jnp.allclose(out, ref_bf16, atol=2e-3, rtol=2e-3), \
        "mismatch vs bf16-matched reference"

    # Semantic check vs the pure-f32 PyTorch-equivalent forward (loose tol
    # accounts for bf16 matmul inputs).
    ref_f32 = reference_forward_f32(x, params)
    assert jnp.allclose(out, ref_f32, atol=3e-2, rtol=3e-2), \
        "mismatch vs f32 reference"

    # Softmax rows sum to ~1 (exact divide -> well within tolerance).
    assert jnp.allclose(jnp.sum(out, axis=1), jnp.ones((batch,)), atol=1e-3)

    print("KERNEL_OK")
</pallas_src>

<mosaic_0001>
module attributes {stable_mosaic.version = 11 : i64} {
  func.func @_discriminator_kernel(%arg0: i32, %arg1: memref<16x128xbf16, #tpu.memory_space<vmem>>, %arg2: memref<24x16xbf16, #tpu.memory_space<vmem>>, %arg3: memref<32x24xbf16, #tpu.memory_space<vmem>>, %arg4: memref<8x32xbf16, #tpu.memory_space<vmem>>, %arg5: memref<64x1xf32, #tpu.memory_space<vmem>>, %arg6: memref<8x128xf32, #tpu.memory_space<vmem>>) attributes {dimension_semantics = [#tpu.dimension_semantics<parallel>], iteration_bounds = array<i64: 2>, scalar_prefetch = 0 : i64, scratch_operands = 0 : i64, tpu.core_type = #tpu.core_type<tc>, window_params = [{transform_indices = @transform_0, window_bounds = array<i64: 16, 128>}, {pipeline_mode = #tpu.pipeline_mode<synchronous>, transform_indices = @transform_1, window_bounds = array<i64: 24, 16>}, {pipeline_mode = #tpu.pipeline_mode<synchronous>, transform_indices = @transform_2, window_bounds = array<i64: 32, 24>}, {pipeline_mode = #tpu.pipeline_mode<synchronous>, transform_indices = @transform_3, window_bounds = array<i64: 8, 32>}, {pipeline_mode = #tpu.pipeline_mode<synchronous>, transform_indices = @transform_4, window_bounds = array<i64: 64, 1>}, {transform_indices = @transform_5, window_bounds = array<i64: 8, 128>}]} {
    %c0 = arith.constant 0 : index
    %c0_0 = arith.constant 0 : index
    %0 = vector.load %arg1[%c0, %c0_0] : memref<16x128xbf16, #tpu.memory_space<vmem>>, vector<16x128xbf16>
    %c0_1 = arith.constant 0 : index
    %c0_2 = arith.constant 0 : index
    %1 = vector.load %arg5[%c0_1, %c0_2] : memref<64x1xf32, #tpu.memory_space<vmem>>, vector<24x1xf32>
    %c24 = arith.constant 24 : index
    %c0_3 = arith.constant 0 : index
    %2 = vector.load %arg5[%c24, %c0_3] : memref<64x1xf32, #tpu.memory_space<vmem>>, vector<32x1xf32>
    %c56 = arith.constant 56 : index
    %c0_4 = arith.constant 0 : index
    %3 = vector.load %arg5[%c56, %c0_4] : memref<64x1xf32, #tpu.memory_space<vmem>>, vector<8x1xf32>
    %c0_5 = arith.constant 0 : index
    %c0_6 = arith.constant 0 : index
    %4 = vector.load %arg2[%c0_5, %c0_6] : memref<24x16xbf16, #tpu.memory_space<vmem>>, vector<24x16xbf16>
    %cst = arith.constant dense<0.000000e+00> : vector<24x128xf32>
    %5 = tpu.matmul %4, %0, %cst {dimension_numbers = #tpu.dot_dimension_numbers<[1], [0], [0], [1], [0, 0, 1, 1], [], []>} : vector<24x16xbf16>, vector<16x128xbf16>, vector<24x128xf32> -> vector<24x128xf32>
    %6 = vector.broadcast %1 : vector<24x1xf32> to vector<24x128xf32>
    %7 = arith.addf %5, %6 : vector<24x128xf32>
    %cst_7 = arith.constant 0.000000e+00 : f32
    %8 = vector.broadcast %cst_7 : f32 to vector<24x128xf32>
    %9 = arith.maximumf %7, %8 : vector<24x128xf32>
    %c0_8 = arith.constant 0 : index
    %c0_9 = arith.constant 0 : index
    %10 = vector.load %arg3[%c0_8, %c0_9] : memref<32x24xbf16, #tpu.memory_space<vmem>>, vector<32x24xbf16>
    %11 = arith.truncf %9 : vector<24x128xf32> to vector<24x128xbf16>
    %cst_10 = arith.constant dense<0.000000e+00> : vector<32x128xf32>
    %12 = tpu.matmul %10, %11, %cst_10 {dimension_numbers = #tpu.dot_dimension_numbers<[1], [0], [0], [1], [0, 0, 1, 1], [], []>} : vector<32x24xbf16>, vector<24x128xbf16>, vector<32x128xf32> -> vector<32x128xf32>
    %13 = vector.broadcast %2 : vector<32x1xf32> to vector<32x128xf32>
    %14 = arith.addf %12, %13 : vector<32x128xf32>
    %cst_11 = arith.constant 0.000000e+00 : f32
    %15 = vector.broadcast %cst_11 : f32 to vector<32x128xf32>
    %16 = arith.maximumf %14, %15 : vector<32x128xf32>
    %c0_12 = arith.constant 0 : index
    %c0_13 = arith.constant 0 : index
    %17 = vector.load %arg4[%c0_12, %c0_13] : memref<8x32xbf16, #tpu.memory_space<vmem>>, vector<8x32xbf16>
    %18 = arith.truncf %16 : vector<32x128xf32> to vector<32x128xbf16>
    %cst_14 = arith.constant dense<0.000000e+00> : vector<8x128xf32>
    %19 = tpu.matmul %17, %18, %cst_14 {dimension_numbers = #tpu.dot_dimension_numbers<[1], [0], [0], [1], [0, 0, 1, 1], [], []>} : vector<8x32xbf16>, vector<32x128xbf16>, vector<8x128xf32> -> vector<8x128xf32>
    %20 = vector.broadcast %3 : vector<8x1xf32> to vector<8x128xf32>
    %21 = arith.addf %19, %20 : vector<8x128xf32>
    %cst_15 = arith.constant dense<0xFF800000> : vector<128xf32>
    %22 = vector.multi_reduction <maximumf>, %21, %cst_15 [0] : vector<8x128xf32> to vector<128xf32>
    %23 = vector.shape_cast %22 : vector<128xf32> to vector<1x128xf32>
    %24 = vector.broadcast %23 : vector<1x128xf32> to vector<8x128xf32>
    %25 = arith.subf %21, %24 : vector<8x128xf32>
    %26 = math.exp %25 : vector<8x128xf32>
    %cst_16 = arith.constant dense<0.000000e+00> : vector<128xf32>
    %27 = vector.multi_reduction <add>, %26, %cst_16 [0] : vector<8x128xf32> to vector<128xf32>
    %28 = vector.shape_cast %27 : vector<128xf32> to vector<1x128xf32>
    %29 = vector.broadcast %28 : vector<1x128xf32> to vector<8x128xf32>
    %30 = arith.divf %26, %29 : vector<8x128xf32>
    %c0_17 = arith.constant 0 : index
    %c0_18 = arith.constant 0 : index
    %31 = vector.load %arg6[%c0_17, %c0_18] : memref<8x128xf32, #tpu.memory_space<vmem>>, vector<8x128xf32>
    tpu.vector_store %arg6[%c0_17, %c0_18], %30 {strides = array<i32>} : memref<8x128xf32, #tpu.memory_space<vmem>>, vector<8x128xf32>,
    return
  }
  func.func @transform_0(%arg0: i32) -> (i32, i32) {
    %c0_i32 = arith.constant 0 : i32
    %c0_i32_0 = arith.constant 0 : i32
    return %c0_i32, %arg0 : i32, i32
  }
  func.func @transform_1(%arg0: i32) -> (i32, i32) {
    %c0_i32 = arith.constant 0 : i32
    %c0_i32_0 = arith.constant 0 : i32
    %c0_i32_1 = arith.constant 0 : i32
    return %c0_i32, %c0_i32_0 : i32, i32
  }
  func.func @transform_2(%arg0: i32) -> (i32, i32) {
    %c0_i32 = arith.constant 0 : i32
    %c0_i32_0 = arith.constant 0 : i32
    %c0_i32_1 = arith.constant 0 : i32
    return %c0_i32, %c0_i32_0 : i32, i32
  }
  func.func @transform_3(%arg0: i32) -> (i32, i32) {
    %c0_i32 = arith.constant 0 : i32
    %c0_i32_0 = arith.constant 0 : i32
    %c0_i32_1 = arith.constant 0 : i32
    return %c0_i32, %c0_i32_0 : i32, i32
  }
  func.func @transform_4(%arg0: i32) -> (i32, i32) {
    %c0_i32 = arith.constant 0 : i32
    %c0_i32_0 = arith.constant 0 : i32
    %c0_i32_1 = arith.constant 0 : i32
    return %c0_i32, %c0_i32_0 : i32, i32
  }
  func.func @transform_5(%arg0: i32) -> (i32, i32) {
    %c0_i32 = arith.constant 0 : i32
    %c0_i32_0 = arith.constant 0 : i32
    return %c0_i32, %arg0 : i32, i32
  }
}

</mosaic_0001>

<bundles_post_ra>
// kernel: tpu_custom_call.1
= control target key start
LH: loop header
LB: loop body
LE: loop exit
PB: predicated region body
PF: predicated region fallthrough
CT: control target
= control target key end

     0   :  { %10 = vsyncpa [#allocation4], 0  ;;  %s980_s0 = inlined_call_operand.vmem [shape: bf16[16,256], index: 0, kind: input, shape index: {}]   ;;  %s981_s1 = inlined_call_operand.vmem [shape: bf16[24,16], index: 1, kind: input, shape index: {}]   ;;  %s982_s2 = inlined_call_operand.vmem [shape: bf16[32,24], index: 2, kind: input, shape index: {}]   ;;  %s983_s3 = inlined_call_operand.vmem [shape: bf16[8,32], index: 3, kind: input, shape index: {}]   ;;  %s984_s4 = inlined_call_operand.vmem [shape: f32[64,1], index: 4, kind: input, shape index: {}]   ;;  %s985_s5 = inlined_call_operand.hbm [shape: f32[8,256], index: 5, kind: output, shape index: {}]  }
   0x1   :  { %12 = vsyncpa [#allocation4 + $0x1], 0  ;;  %s824_s18 = smov 0   ;;  %s826_s19 = smov 0  }
   0x2   :  { %s828_s20 = smov 0   ;;  %s830_s21 = smov 0  }
   0x3 LB: > { %s617_s22 = sadd.s32 4294967295, %s788_s21   ;;  %s618_s23 = sadd.s32 4294967294, %s788_s21   ;;  %s788_s21 = sphi %s830_s21, %s991_s21   ;;  %s784_s20 = sphi %s828_s20, %s990_s20   ;;  %s780_s19 = sphi %s826_s19, %s989_s19   ;;  %s776_s18 = sphi %s824_s18, %s988_s18  }
   0x4   : > { %s847_s24 = sadd.s32 1, %s788_s21   ;;  %s25_s25 = sadd.s32 1, %s784_s20 }
   0x5   : > { %s22_s26 = ssub.s32 %s788_s21, %s847_s24  ;;  %p32_p0 = scmp.ne.s32.totalorder %s784_s20, %s780_s19 }
   0x6   : > { %p23_p1 = scmp.eq.s32.totalorder %s22_s26, 0  ;;  %p33_p2 = scmp.eq.s32.totalorder %s788_s21, 0 }
   0x7   : > { %p146_p3 = scmp.eq.s32.totalorder %s617_s22, 1  ;;  %p151_p4 = scmp.ne.s32.totalorder %s780_s19, %s776_s18 }
   0x8   : > { %s860_s27 = scalar_select %p23_p1, %s784_s20, %s25_s25  }
   0x9   : > { %p34_p5 = por %p33_p2, %p32_p0  ;;  %p862_p6 = por %p146_p3, %p32_p0 }
   0xa   : > { %p152_p7 = scmp.eq.s32.totalorder %s618_s23, 1  ;;  %p620_p9 = scmp.ge.s32.totalorder %s788_s21, 2 }
   0xc   : > { %p866_p8 = por %p152_p7, %p151_p4  ;;  %180 = sbr.rel (%p620_p9) target bundleno = 26 (0x1a), region = 32 }
  0x13   : > { %183 = sbr.rel (!%p34_p5) target bundleno = 26 (0x1a), region = 36  ;;  %s185_s30 = sand.u32 (%p34_p5), 1, %s784_s20  }
  0x14   : > { %s622_s6 = sshll.u32 (%p34_p5), %s788_s21, 2  ;;  %s621_s7 = sshll.u32 (%p34_p5), %s185_s30, 3 }
  0x15   : > { %s189_s10 = scalar_lea.vmem (%p34_p5), %s980_s0, %s622_s6  ;;  %s187_s11 = scalar_lea.vmem (%p34_p5), [#allocation2], %s621_s7 }
  0x16   : > { %v205_v0 = vld [vmem:[%s189_s10] sm:$0xf] (%p34_p5)  ;;  %v207_v1 = vld [vmem:[%s189_s10 + $0x8] sm:$0xf] (%p34_p5) }
  0x17   : > { %206 = vst [vmem:[%s187_s11] sm:$0xf] (%p34_p5), %v205_v0  ;;  %208 = vst [vmem:[%s187_s11 + $0x4] sm:$0xf] (%p34_p5), %v207_v1 }
  0x1a PF: > { %p623_p10 = scmp.ge.s32.totalorder %s788_s21, 1  ;;  %p234_p11 = scmp.lt.s32.totalorder %s788_s21, 3 }
  0x1c   : > { %p235_p12 = pnand %p623_p10, %p234_p11 }
  0x1d   : > { %s241_s12 = sand.u32 (!%p235_p12), 1, %s780_s19   ;;  %v718_v2 = vld [vmem:[%s981_s1] sm:$0xff] (!%p235_p12)   ;;  %vm311_vm0 = vcmask (!%p235_p12), 130048   ;;  %v273_v4 = vld [vmem:[%s984_s4 + $0x10] sm:$0xff] (!%p235_p12)  ;;  %v790_v6 = vmov (!%p235_p12), 0   ;;  %v272_v8 = vld [vmem:[%s984_s4 + $0x8] sm:$0xff] (!%p235_p12) }
  0x1e   : > { %238 = sbr.rel (%p235_p12) target bundleno = 774 (0x306), region = 77  ;;  %s886_s15 = sshll.u32 (!%p235_p12), %s241_s12, 3  ;;  %652 = vmatprep.mubr.msk.bf16.mxu0 (!%p235_p12), %vm311_vm0, %v718_v2  ;;  %v271_v3 = vld [vmem:[%s984_s4] sm:$0xff] (!%p235_p12)  ;;  %715 = vset.pattern.permute.xlu0 (!%p235_p12), %v790_v6  ;;  %v719_v7 = vld [vmem:[%s981_s1 + $0x8] ss:$0 sps:$4 sm:$0xff] (!%p235_p12)   ;;  %v274_v9 = vld [vmem:[%s984_s4 + $0x18] sm:$0xff] (!%p235_p12) }
  0x1f   : > { %s243_s26 = scalar_lea.vmem (!%p235_p12), [#allocation2], %s886_s15  ;;  %716 = vset.pattern.permute.xlu1 (!%p235_p12), %v790_v6  ;;  %284 = vperm.xlu0 (!%p235_p12), %715, %v271_v3   ;;  %v275_v10 = vld [vmem:[%s984_s4 + $0x20] sm:$0xff] (!%p235_p12)  ;;  %v276_v11 = vld [vmem:[%s984_s4 + $0x28] sm:$0xff] (!%p235_p12)  ;;  %v277_v12 = vld [vmem:[%s984_s4 + $0x30] sm:$0xff] (!%p235_p12)  ;;  %vm405_vm1 = vcmask (!%p235_p12), 195584   ;;  %vm412_vm2 = vcmask (!%p235_p12), 1043456  }
  0x20   : > { %v717_v5 = vld [vmem:[%s243_s26] sm:$0xff] (!%p235_p12)   ;;  %294 = vperm.xlu1 (!%p235_p12), %716, %v273_v4   ;;  %v278_v13 = vld [vmem:[%s984_s4 + $0x38] sm:$0xff] (!%p235_p12)  ;;  %v791_v32 = vmov (!%p235_p12), 0.0   ;;  %vm792_vm3 = vmmov (!%p235_p12), 0   ;;  %vm477_vm4 = vcmask (!%p235_p12), 261120   ;;  %s637_s11 = sshll.u32 (!%p235_p12), %s617_s22, 7 }
  0x21   : > { %650 = vmatprep.subr.bf16.mxu0 (!%p235_p12), %v717_v5  ;;  %v720_v14 = vld [vmem:[%s982_s2] sm:$0xff] (!%p235_p12)   ;;  %v721_v31 = vld [vmem:[%s982_s2 + $0x8] sm:$0xff] (!%p235_p12)   ;;  %s267_s13 = scalar_lea.vmem (!%p235_p12), [#allocation3], %s886_s15  ;;  %s935_s23 = scalar_lea.hbm (!%p235_p12), %s985_s5, %s637_s11 }
  0x22   : > { %651 = vmatpush3.bf16.msra.mxu0 (!%p235_p12), %v717_v5  ;;  %660 = vmatprep.mubr.msk.bf16.mxu1 (!%p235_p12), %vm405_vm1, %v720_v14  ;;  %v469_v51 = vld [vmem:[%s983_s3] sm:$0xf] (!%p235_p12)  ;;  %s553_s14 = sshll.u32 (!%p235_p12), %s267_s13, 4  ;;  %s540_s25 = scalar_lea.sflag (!%p235_p12), [#allocation4], %s241_s12  ;;  %s937_s14 = int_to_ptr.vmem [resolvable:$true] %s553_s14 }
  0x23   : > { %289 = vperm.xlu0 (!%p235_p12), %715, %v272_v8   ;;  %664 = vmatprep.subr.bf16.mxu0 (!%p235_p12), %v791_v32  ;;  %s726_s26 = scalar_lea.vmem (!%p235_p12), %s937_s14, 128  ;;  %s793_s22 = smov (!%p235_p12), [#allocation3]  }
  0x24   : > { %377 = vperm.xlu1 (!%p235_p12), %716, %v274_v9   ;;  %p727_p13 = scmp.ne.s32.totalorder (!%p235_p12), %s937_s14, %s726_s26  ;;  %s730_s15 = sshll.u32 (!%p235_p12), %s793_s22, 4  ;;  %s731_s15 = int_to_ptr.vmem [resolvable:$false] %s730_s15 }
  0x25   : > { %653 = vmatmul.mubr.msk.bf16.vlgmr.msra.gmra.mrb[0].mxu0 %vm311_vm0, %v719_v7  ;;  %s732_s30 = scalar_lea.vmem %s731_s15, 256  ;;  %p733_p2 = scmp.lt.s32.totalorder %s937_s14, %s731_s15 }
  0x26   : > { %668 = vmatprep.mubr.msk.bf16.mxu0 %vm792_vm3, %v791_v32  ;;  %p728_p0 = pnand %p727_p13, %p862_p6  ;;  %p734_p3 = scmp.lt.s32.totalorder %s732_s30, %s726_s26 }
  0x27   : > { %382 = vperm.xlu0 %715, %v275_v10  }
  0x28   : > { %387 = vperm.xlu1 %716, %v276_v11   ;;  %p729_p1 = pneg %p728_p0  ;;  %p735_p4 = por %p734_p3, %p733_p2 }
  0x2a   : > { %p736_p5 = pnand %p735_p4, %p729_p1 }
  0x2b   : > { %392 = vperm.xlu0 %715, %v277_v12  }
  0x2c   : > { %474 = vperm.xlu1 %716, %v278_v13  }
  0x9e   : > { %v285_v15 = vpop.permute.xlu0 %284 }
  0x9f   : > { %v295_v17 = vpop.permute.xlu1 %294 }
  0xa2   : > { %v290_v22 = vpop.permute.xlu0 %289 }
  0xa3   : > { %v378_v33 = vpop.permute.xlu1 %377 }
  0xa6   : > { %v383_v34 = vpop.permute.xlu0 %382 }
  0xa7   : > { %v388_v35 = vpop.permute.xlu1 %387 }
  0xaa   : > { %v393_v39 = vpop.permute.xlu0 %392 }
  0xab   : > { %v475_v52 = vpop.permute.xlu1 %474 }
  0xf8   : > { %v654_v16 = vpop.f32.mrb[0].mxu0 }
  0xf9   : > { %v352_v18 = vpop.f32.mrb[1].mxu0  ;;  %v361_v19 = vadd.f32 %v654_v16, %v295_v17 }
  0xfa   : > { %v353_v20 = vadd.f32 %v352_v18, %v285_v15  ;;  %v655_v21 = vpop.f32.mrb[2].mxu0 }
  0xfb   : > { %v355_v23 = vpop.f32.mrb[3].mxu0  ;;  %v368_v25 = vmax.f32 %v361_v19, 0.0 }
  0xfc   : > { %v356_v24 = vadd.f32 %v355_v23, %v290_v22  ;;  %v366_v26 = vmax.f32 %v353_v20, 0.0 }
  0xfd   : > { %v374_v29 = vpack.c.bf16 %v368_v25, %v368_v25 }
  0xfe   : > { %v367_v27 = vmax.f32 %v356_v24, 0.0 }
  0xff   : > { %v414_v30 = vsel %vm412_vm2, %v374_v29, 0 }
 0x100   : > { %v373_v28 = vpack.c.bf16 %v367_v27, %v366_v26 }
 0x102   : > { %656 = vmatprep.subr.bf16.mxu1 %v373_v28 }
 0x103   : > { %657 = vmatpush3.bf16.msra.mxu1 %v373_v28 }
 0x104   : > { %672 = vmatprep.subr.msk.bf16.mxu1 %vm412_vm2, %v374_v29 }
 0x107   : > { %659 = vmatpush3.bf16.msra.mxu1 %v414_v30 }
 0x10a   : > { %661 = vmatmul.mubr.msk.bf16.vlgmr.msra.gmra.mrb[0].mxu1 %vm405_vm1, %v721_v31 }
 0x1dd   : > { %v662_v36 = vpop.f32.mrb[0].mxu1 }
 0x1de   : > { %v459_v37 = vadd.f32 %v662_v36, %v388_v35  ;;  %v450_v38 = vpop.f32.mrb[1].mxu1 }
 0x1df   : > { %v451_v40 = vadd.f32 %v450_v38, %v378_v33  ;;  %v663_v41 = vpop.f32.mrb[2].mxu1 }
 0x1e0   : > { %v462_v42 = vadd.f32 %v663_v41, %v393_v39  ;;  %v453_v43 = vpop.f32.mrb[3].mxu1  ;;  %v467_v45 = vmax.f32 %v459_v37, 0.0 }
 0x1e1   : > { %v454_v44 = vadd.f32 %v453_v43, %v383_v34  ;;  %v465_v47 = vmax.f32 %v451_v40, 0.0 }
 0x1e2   : > { %v468_v46 = vmax.f32 %v462_v42, 0.0 }
 0x1e3   : > { %v466_v48 = vmax.f32 %v454_v44, 0.0 }
 0x1e4   : > { %v471_v49 = vpack.c.bf16 %v468_v46, %v467_v45 }
 0x1e5   : > { %v470_v50 = vpack.c.bf16 %v466_v48, %v465_v47 }
 0x1e7   : > { %665 = vmatpush3.bf16.msra.mxu0 %v470_v50 }
 0x1e8   : > { %666 = vmatprep.subr.bf16.mxu0 %v791_v32 }
 0x1eb   : > { %667 = vmatpush3.bf16.msra.mxu0 %v471_v49 }
 0x1ee   : > { %669 = vmatmul.mubr.msk.bf16.vlgmr.msra.gmra.mrb[4].mxu0 %vm477_vm4, %v469_v51 }
 0x2c1   : > { %v515_v53 = vpop.f32.mrb[4].mxu0 }
 0x2c2   : > { %v516_v54 = vadd.f32 %v515_v53, %v475_v52  ;;  %v670_v55 = vpop.f32.mrb[5].mxu0 }
 0x2c3   : > { %v518_v56 = vpop.f32.mrb[6].mxu0 }
 0x2c4   : > { %v521_v57 = vrot.slane %v516_v54, 4  ;;  %v671_v58 = vpop.f32.mrb[7].mxu0 }
 0x2c6   : > { %v522_v59 = vmax.f32 %v516_v54, %v521_v57 }
 0x2c8   : > { %v523_v60 = vrot.slane %v522_v59, 2 }
 0x2ca   : > { %v524_v61 = vmax.f32 %v522_v59, %v523_v60 }
 0x2cc   : > { %v525_v62 = vrot.slane %v524_v61, 1 }
 0x2ce   : > { %v526_v63 = vmax.f32 %v524_v61, %v525_v62 }
 0x2d0   : > { %v527_v0 = vsub.f32 %v516_v54, %v526_v63 }
 0x2d2   : > { %v528_v1 = vmul.f32 1.442695, %v527_v0 }
 0x2d4   : > { %722 = vpow2.f32 %v528_v1 }
 0x2de   : > { %v723_v2 = vpop.eup %722 }
 0x2df   : > { %v530_v3 = vrot.slane %v723_v2, 4 }
 0x2e1   : > { %v531_v4 = vadd.f32 %v723_v2, %v530_v3 }
 0x2e3   : > { %v532_v5 = vrot.slane %v531_v4, 2 }
 0x2e5   : > { %v533_v6 = vadd.f32 %v532_v5, %v531_v4 }
 0x2e7   : > { %v534_v7 = vrot.slane %v533_v6, 1 }
 0x2e9   : > { %v535_v8 = vadd.f32 %v534_v7, %v533_v6 }
 0x2eb   : > { %724 = vrcp.f32 %v535_v8 }
 0x2f5   : > { %v725_v9 = vpop.eup %724 }
 0x2f6   : > { %v537_v10 = vmul.f32 %v725_v9, %v723_v2 }
 0x2f8   : > { %538 = vst [vmem:[%s267_s13] sm:$0xff] %v537_v10 }
 0x2f9   : > { %739 = shalt.err (!%p736_p5)
}
 0x2fa   : > { %s740_s12 = scalar_lea.hbm %s935_s23, 128  ;;  %s744_s8 = scalar_lea.hbm %s985_s5, 256 }
 0x2fb   : > { %p741_p7 = scmp.ne.s32.totalorder %s935_s23, %s740_s12  ;;  %p745_p12 = scmp.lt.u32.totalorder %s935_s23, %s985_s5 }
 0x2fc   : > { %p746_p13 = scmp.lt.u32.totalorder %s744_s8, %s740_s12  ;;  %p748_p1 = scmp.lt.u32.totalorder %s740_s12, %s935_s23 }
 0x2fd   : > { %p742_p10 = pnand %p741_p7, %p862_p6 }
 0x2fe   : > { %p747_p0 = por %p746_p13, %p745_p12 }
 0x2ff   : > { %p743_p11 = pneg %p742_p10 }
 0x300   : > { %p749_p2 = por %p748_p1, %p747_p0 }
 0x302   : > { %p750_p3 = pnand %p749_p2, %p743_p11 }
 0x304   : > { %753 = shalt.err (!%p750_p3)
}
 0x305   : > { %673 = dma.vmem_to_hbm [thread:$0]  (%p862_p6), %s937_s14, 128, %s935_s23, %s540_s25  }
 0x306 PF: > { %s565_s11 = sand.u32 1, %s776_s18   ;;  %p676_p4 = pnand %p620_p9, %p866_p8 }
 0x307   : > { %s566_s13 = scalar_lea.sflag [#allocation4], %s565_s11 }
 0x308   : > { %771 = dma.done.wait (!%p676_p4), %s566_s13, 128  }
 0x309   : > { %773 = vsyncadd (!%p676_p4), %s566_s13, 4294967168  ;;  %p15_p5 = scmp.ge.s32.totalorder %s847_s24, 4   ;;  %s988_s18 = smov %s780_s19 }
 0x30a   : > { %s989_s19 = smov %s784_s20  ;;  %s990_s20 = smov %s860_s27 }
 0x30b   : > { %s991_s21 = smov %s847_s24  ;;  %17 = sbr.rel (!%p15_p5) target bundleno = 3 (0x3), region = 121 }
 0x312   :  { %571 = vsyncpa [#allocation4], 1 }
 0x313   :  { %573 = vsyncpa [#allocation4 + $0x1], 1 }

</bundles_post_ra>
